<compile_context>
chip_gen: v6e
topology: v6e:2x2x1
jax: 0.10.0
libtpu: 0.0.40
codegen_flags: <defaults>
</compile_context>

<pallas_src>
import functools

import jax
import jax.numpy as jnp
from jax.experimental import pallas as pl
from jax.experimental.pallas import tpu as pltpu


def _disc_kernel(x_ref, w_ref, b_ref, o_ref):
    # x_ref: (bb, D) f32 batch tile (batch rows on sublanes, features on lanes)
    # w_ref: (1, D)  f32 collapsed weight row, resident in VMEM across steps
    # b_ref: (1, 1)  f32 collapsed bias, SMEM scalar
    # o_ref: (1, bb) f32 lane-dense sigmoid row for this tile
    x = x_ref[...]
    d = x.shape[1]

    # Broadcast the weight row to 8 sublanes so the MXU sees a well-aligned
    # (8, D) LHS instead of a degenerate M=1 operand; rows are identical and
    # we keep only row 0 of the result.  (One cheap sublane broadcast per step.)
    w8 = jnp.broadcast_to(w_ref[...], (8, d))

    # (8, D) x (bb, D)^T -> (8, bb): contracting over the feature dim puts the
    # batch index on LANES, i.e. the result is already lane-dense.
    logits = jax.lax.dot_general(
        w8, x,
        dimension_numbers=(((1,), (1,)), ((), ())),
        preferred_element_type=jnp.float32)

    row = logits[0:1, :] + b_ref[0, 0]          # (1, bb) + scalar bias
    # nn.LeakyReLU(True) has slope 1.0 -> identity; no activation ops exist in
    # the collapsed network.  Only the final Sigmoid remains.
    o_ref[...] = jax.nn.sigmoid(row).astype(o_ref.dtype)


def init_params(key, dim):
    """PyTorch-Linear-style init: U(-1/sqrt(fan_in), 1/sqrt(fan_in)).

    Weights stored as (in, out) for the x @ W convention, except the last
    layer which is stored as a (1, 32) row.  All params fp32 (matching the
    PyTorch module's parameter dtype).
    """
    dims = [(dim, 256), (256, 128), (128, 32), (32, 1)]
    params = []
    for li, (fan_in, fan_out) in enumerate(dims):
        key, kw, kb = jax.random.split(key, 3)
        bound = 1.0 / jnp.sqrt(float(fan_in))
        if li == 3:
            w = jax.random.uniform(kw, (1, fan_in), jnp.float32, -bound, bound)
            b = jax.random.uniform(kb, (1, 1), jnp.float32, -bound, bound)
        else:
            w = jax.random.uniform(kw, (fan_in, fan_out), jnp.float32, -bound, bound)
            b = jax.random.uniform(kb, (1, fan_out), jnp.float32, -bound, bound)
        params.append((w, b))
    return params


def _round_up(n, m):
    return -(-n // m) * m


@functools.partial(jax.jit, static_argnames=("block_b",))
def discriminator_forward(x, params, block_b=2048):
    B, D = x.shape
    (w1, b1), (w2, b2), (w3, b3), (w4, b4) = params

    # ---- Collapse the identity-activation chain into one affine map (f32) ---
    w_eff = w1 @ w2 @ w3 @ w4.T                        # (D, 1)
    b_eff = ((b1 @ w2 + b2) @ w3 + b3) @ w4.T + b4     # (1, 1)
    w_row = w_eff.T                                    # (1, D) row for kernel

    # ---- Batch tiling --------------------------------------------------------
    # The lane-dense output row requires the batch tile to be a multiple of
    # 128.  Pad only up to the next multiple of 128, then pick the largest
    # tile <= block_b that divides the padded batch exactly (no extra waste).
    b128 = _round_up(B, 128)
    bb = min(_round_up(block_b, 128), b128)
    while b128 % bb:
        bb -= 128
    b_pad = b128

    xp = x if b_pad == B else jnp.pad(x, ((0, b_pad - B), (0, 0)))
    # TODO(synk): for very large ragged B the jnp.pad is one extra HBM pass
    # over x; an in-kernel tail mask would avoid it.

    grid_spec = pltpu.PrefetchScalarGridSpec(
        num_scalar_prefetch=0,
        grid=(b_pad // bb,),
        in_specs=[
            pl.BlockSpec((bb, D), lambda i: (i, 0)),            # x batch tile
            pl.BlockSpec((1, D), lambda i: (0, 0)),             # W_eff row (resident)
            pl.BlockSpec(memory_space=pltpu.MemorySpace.SMEM),  # b_eff scalar
        ],
        out_specs=pl.BlockSpec((1, bb), lambda i: (0, i)),      # lane-dense row
    )

    out_row = pl.pallas_call(
        _disc_kernel,
        out_shape=jax.ShapeDtypeStruct((1, b_pad), jnp.float32),
        grid_spec=grid_spec,
        compiler_params=pltpu.CompilerParams(
            # batch axis is fully independent across steps
            dimension_semantics=("parallel",)),
    )(xp, w_row, b_eff)

    return out_row[0, :B][:, None]                     # (B, 1)


def discriminator_reference(x, params):
    # fp32 layer-by-layer reference mirroring the PyTorch module
    # (LeakyReLU with slope 1.0 == identity, so omitted).
    (w1, b1), (w2, b2), (w3, b3), (w4, b4) = params
    h = x @ w1 + b1
    h = h @ w2 + b2
    h = h @ w3 + b3
    return jax.nn.sigmoid(h @ w4.T + b4)


if __name__ == "__main__":
    key = jax.random.PRNGKey(0)
    kx, kx2, kp = jax.random.split(key, 3)

    DIM = 64                              # the ctor arg `dim`
    params = init_params(kp, DIM)

    # Small batch: single 128-row tile (padded), single grid step.
    B_small = 16
    x_small = jax.random.normal(kx, (B_small, DIM), jnp.float32)
    out_small = jax.block_until_ready(discriminator_forward(x_small, params))
    ref_small = discriminator_reference(x_small, params)
    assert out_small.shape == (B_small, 1)
    # All-f32 path -> tight tolerance (only reassociation differences remain).
    assert jnp.allclose(out_small, ref_small, atol=1e-4, rtol=1e-4), \
        "small-batch mismatch vs reference"

    # Ragged larger batch: pads 300 -> 384 and runs a single 384-row step.
    B_big = 300
    x_big = jax.random.normal(kx2, (B_big, DIM), jnp.float32)
    out_big = jax.block_until_ready(discriminator_forward(x_big, params))
    ref_big = discriminator_reference(x_big, params)
    assert out_big.shape == (B_big, 1)
    assert jnp.allclose(out_big, ref_big, atol=1e-4, rtol=1e-4), \
        "large-batch mismatch vs reference"

    print("KERNEL_OK")
</pallas_src>

<mosaic_0001>
module attributes {stable_mosaic.version = 11 : i64} {
  func.func @_disc_kernel(%arg0: i32, %arg1: memref<128x64xf32, #tpu.memory_space<vmem>>, %arg2: memref<1x64xf32, #tpu.memory_space<vmem>>, %arg3: memref<1x1xf32, #tpu.memory_space<smem>>, %arg4: memref<1x128xf32, #tpu.memory_space<vmem>>) attributes {dimension_semantics = [#tpu.dimension_semantics<parallel>], iteration_bounds = array<i64: 1>, scalar_prefetch = 0 : i64, scratch_operands = 0 : i64, tpu.core_type = #tpu.core_type<tc>, window_params = [{transform_indices = @transform_0, window_bounds = array<i64: 128, 64>}, {pipeline_mode = #tpu.pipeline_mode<synchronous>, transform_indices = @transform_1, window_bounds = array<i64: 1, 64>}, {transform_indices = @transform_2, window_bounds = array<i64: 1, 1>}, {transform_indices = @transform_3, window_bounds = array<i64: 1, 128>}]} {
    %c0 = arith.constant 0 : index
    %c0_0 = arith.constant 0 : index
    %0 = vector.load %arg1[%c0, %c0_0] : memref<128x64xf32, #tpu.memory_space<vmem>>, vector<128x64xf32>
    %c0_1 = arith.constant 0 : index
    %c0_2 = arith.constant 0 : index
    %1 = vector.load %arg2[%c0_1, %c0_2] : memref<1x64xf32, #tpu.memory_space<vmem>>, vector<1x64xf32>
    %2 = vector.shape_cast %1 : vector<1x64xf32> to vector<1x64xf32>
    %3 = vector.broadcast %2 : vector<1x64xf32> to vector<8x64xf32>
    %cst = arith.constant dense<0.000000e+00> : vector<8x128xf32>
    %4 = tpu.matmul %3, %0, %cst {dimension_numbers = #tpu.dot_dimension_numbers<[1], [1], [0], [0], [0, 0, 1, 0], [], []>} : vector<8x64xf32>, vector<128x64xf32>, vector<8x128xf32> -> vector<8x128xf32>
    %5 = vector.extract_strided_slice %4 {offsets = [0, 0], sizes = [1, 128], strides = [1, 1]} : vector<8x128xf32> to vector<1x128xf32>
    %c0_3 = arith.constant 0 : index
    %c0_4 = arith.constant 0 : index
    %6 = memref.load %arg3[%c0_3, %c0_4] : memref<1x1xf32, #tpu.memory_space<smem>>
    %7 = vector.broadcast %6 : f32 to vector<1x128xf32>
    %8 = arith.addf %5, %7 : vector<1x128xf32>
    %9 = arith.negf %8 : vector<1x128xf32>
    %10 = math.exp %9 : vector<1x128xf32>
    %cst_5 = arith.constant 1.000000e+00 : f32
    %11 = vector.broadcast %cst_5 : f32 to vector<1x128xf32>
    %12 = arith.addf %11, %10 : vector<1x128xf32>
    %13 = arith.divf %11, %12 : vector<1x128xf32>
    %c0_6 = arith.constant 0 : index
    %c0_7 = arith.constant 0 : index
    %14 = vector.load %arg4[%c0_6, %c0_7] : memref<1x128xf32, #tpu.memory_space<vmem>>, vector<1x128xf32>
    tpu.vector_store %arg4[%c0_6, %c0_7], %13 {strides = array<i32>} : memref<1x128xf32, #tpu.memory_space<vmem>>, vector<1x128xf32>,
    return
  }
  func.func @transform_0(%arg0: i32) -> (i32, i32) {
    %c0_i32 = arith.constant 0 : i32
    %c0_i32_0 = arith.constant 0 : i32
    return %arg0, %c0_i32 : i32, i32
  }
  func.func @transform_1(%arg0: i32) -> (i32, i32) {
    %c0_i32 = arith.constant 0 : i32
    %c0_i32_0 = arith.constant 0 : i32
    %c0_i32_1 = arith.constant 0 : i32
    return %c0_i32, %c0_i32_0 : i32, i32
  }
  func.func @transform_2(%arg0: i32) -> (i32, i32) {
    %c0_i32 = arith.constant 0 : i32
    %c0_i32_0 = arith.constant 0 : i32
    %c0_i32_1 = arith.constant 0 : i32
    return %c0_i32, %c0_i32_0 : i32, i32
  }
  func.func @transform_3(%arg0: i32) -> (i32, i32) {
    %c0_i32 = arith.constant 0 : i32
    %c0_i32_0 = arith.constant 0 : i32
    return %c0_i32, %arg0 : i32, i32
  }
}

</mosaic_0001>

<bundles_post_ra>
// kernel: discriminator_forward.1
= control target key start
LH: loop header
LB: loop body
LE: loop exit
PB: predicated region body
PF: predicated region fallthrough
CT: control target
= control target key end

     0   :  { %vm37_vm0 = vcmask 523264   ;;  %v249_v0 = vmov 0.0   ;;  %vm250_vm1 = vmmov 0   ;;  %s345_s0 = inlined_call_operand.vmem [shape: f32[128,64], index: 0, kind: input, shape index: {}]   ;;  %s346_s1 = inlined_call_operand.vmem [shape: f32[1,64], index: 1, kind: input, shape index: {}]   ;;  %s347_s2 = inlined_call_operand.<no memory space> [shape: f32[1,1], index: 2, kind: input, shape index: {}]   ;;  %s348_s3 = inlined_call_operand.vmem [shape: f32[1,128], index: 3, kind: output, shape index: {}]  }
   0x1   :  { %208 = vmatprep.subr.mxu0 %v249_v0  ;;  %v30_v1 = vld [vmem:[%s345_s0 + $0x78] sm:$0xff]  ;;  %240 = vmatprep.mubr.msk.f32.mxu0 %vm250_vm1, %v249_v0  ;;  %v29_v2 = vld [vmem:[%s345_s0 + $0x70] sm:$0xff]  ;;  %v28_v3 = vld [vmem:[%s345_s0 + $0x68] sm:$0xff]  ;;  %v159_v18 = vstv %s347_s2 }
   0x2   :  { %209 = vmatpush3.xpose.msk.msra.mxu0 %vm37_vm0, %v30_v1  ;;  %v27_v4 = vld [vmem:[%s345_s0 + $0x60] sm:$0xff]  ;;  %v26_v5 = vld [vmem:[%s345_s0 + $0x58] sm:$0xff]  ;;  %v25_v6 = vld [vmem:[%s345_s0 + $0x50] sm:$0xff] }
   0x3   :  { %210 = vmatprep.subr.mxu0 %v249_v0  ;;  %v24_v7 = vld [vmem:[%s345_s0 + $0x48] sm:$0xff]  ;;  %v23_v8 = vld [vmem:[%s345_s0 + $0x40] sm:$0xff]  ;;  %v22_v9 = vld [vmem:[%s345_s0 + $0x38] sm:$0xff] }
   0x4   :  { %v21_v10 = vld [vmem:[%s345_s0 + $0x30] sm:$0xff]  ;;  %v20_v11 = vld [vmem:[%s345_s0 + $0x28] sm:$0xff]  ;;  %v19_v12 = vld [vmem:[%s345_s0 + $0x20] sm:$0xff] }
   0x5   :  { %v18_v13 = vld [vmem:[%s345_s0 + $0x18] sm:$0xff]  ;;  %v17_v14 = vld [vmem:[%s345_s0 + $0x10] sm:$0xff]  ;;  %v16_v15 = vld [vmem:[%s345_s0 + $0x8] sm:$0xff] }
   0x6   :  { %211 = vmatpush3.xpose.msk.msra.mxu0 %vm37_vm0, %v29_v2  ;;  %v15_v16 = vld [vmem:[%s345_s0] sm:$0xff] }
   0x7   :  { %212 = vmatprep.subr.mxu0 %v249_v0  ;;  %v172_v17 = vld [vmem:[%s346_s1] ss:$0 sm:$0xff] }
   0xa   :  { %213 = vmatpush3.xpose.msk.msra.mxu0 %vm37_vm0, %v28_v3 }
   0xb   :  { %214 = vmatprep.subr.mxu0 %v249_v0 }
   0xe   :  { %215 = vmatpush3.xpose.msk.msra.mxu0 %vm37_vm0, %v27_v4 }
   0xf   :  { %216 = vmatprep.subr.mxu0 %v249_v0 }
  0x12   :  { %217 = vmatpush3.xpose.msk.msra.mxu0 %vm37_vm0, %v26_v5 }
  0x13   :  { %218 = vmatprep.subr.mxu0 %v249_v0 }
  0x16   :  { %219 = vmatpush3.xpose.msk.msra.mxu0 %vm37_vm0, %v25_v6 }
  0x17   :  { %220 = vmatprep.subr.mxu0 %v249_v0 }
  0x1a   :  { %221 = vmatpush3.xpose.msk.msra.mxu0 %vm37_vm0, %v24_v7 }
  0x1b   :  { %222 = vmatprep.subr.mxu0 %v249_v0 }
  0x1e   :  { %223 = vmatpush3.xpose.msk.msra.mxu0 %vm37_vm0, %v23_v8 }
  0x1f   :  { %224 = vmatprep.subr.mxu0 %v249_v0 }
  0x22   :  { %225 = vmatpush3.xpose.msk.msra.mxu0 %vm37_vm0, %v22_v9 }
  0x23   :  { %226 = vmatprep.subr.mxu0 %v249_v0 }
  0x26   :  { %227 = vmatpush3.xpose.msk.msra.mxu0 %vm37_vm0, %v21_v10 }
  0x27   :  { %228 = vmatprep.subr.mxu0 %v249_v0 }
  0x2a   :  { %229 = vmatpush3.xpose.msk.msra.mxu0 %vm37_vm0, %v20_v11 }
  0x2b   :  { %230 = vmatprep.subr.mxu0 %v249_v0 }
  0x2e   :  { %231 = vmatpush3.xpose.msk.msra.mxu0 %vm37_vm0, %v19_v12 }
  0x2f   :  { %232 = vmatprep.subr.mxu0 %v249_v0 }
  0x32   :  { %233 = vmatpush3.xpose.msk.msra.mxu0 %vm37_vm0, %v18_v13 }
  0x33   :  { %234 = vmatprep.subr.mxu0 %v249_v0 }
  0x36   :  { %235 = vmatpush3.xpose.msk.msra.mxu0 %vm37_vm0, %v17_v14 }
  0x37   :  { %236 = vmatprep.subr.mxu0 %v249_v0 }
  0x3a   :  { %237 = vmatpush3.xpose.msk.msra.mxu0 %vm37_vm0, %v16_v15 }
  0x3b   :  { %238 = vmatprep.subr.mxu0 %v249_v0 }
  0x3e   :  { %239 = vmatpush3.xpose.msk.msra.mxu0 %vm37_vm0, %v15_v16 }
  0x41   :  { %241 = vmatmul.mubr.msk.f32.vlgmr.msra.gmra.mxu0 %vm37_vm0, %v172_v17 }
 0x101   :  { %v154_v19 = vpop.f32.mrf.mxu0 }
 0x102   :  { %v160_v20 = vadd.f32 %v159_v18, %v154_v19 }
 0x103   :  { %v242_v21 = vpop.f32.mrf.mxu0 }
 0x104   :  { %v190_v22 = vmul.f32 -1.442695, %v160_v20 }
 0x106   :  { %245 = vpow2.f32 %v190_v22 }
 0x113   :  { %v246_v23 = vpop.eup %245 }
 0x114   :  { %v164_v24 = vadd.f32 1.0, %v246_v23 }
 0x116   :  { %247 = vrcp.f32 %v164_v24 }
 0x123   :  { %v248_v25 = vpop.eup %247 }
 0x124   :  { %167 = vst [vmem:[%s348_s3] sm:$0x1] %v248_v25 }

</bundles_post_ra>
